<compile_context>
chip_gen: v7x
topology: tpu7x:2x2x1
jax: 0.10.0
libtpu: 0.0.40
codegen_flags: <defaults>
</compile_context>

<pallas_src>
import functools

import jax
import jax.numpy as jnp
from jax.experimental import pallas as pl
from jax.experimental.pallas import tpu as pltpu


# ----------------------------- Pallas kernel --------------------------------
def _seg_mlp_kernel(n_hidden, num_class, chunk, n_sub, *refs):
    """refs = x_ref, [w_i, shift_i] * n_hidden, wf_ref, bf_ref, out_ref

    x_ref:   (tile, c_in)  f32  (cast to bf16 on load)
    w_i:     (c_out, c_in) bf16 (PyTorch (out,in) layout; BN scale pre-folded)
    shift_i: (c_out, 1)    f32  (folded BN shift)
    wf:      (num_class, c_last) bf16, bf: (num_class, 1) f32
    out_ref: (num_class + 1, tile) f32
        rows [0:num_class] = logits^T, row num_class = sigmoid(max(logits, class-axis))
    """
    x_ref = refs[0]
    hid_refs = refs[1:1 + 2 * n_hidden]
    wf_ref = refs[1 + 2 * n_hidden]
    bf_ref = refs[2 + 2 * n_hidden]
    out_ref = refs[3 + 2 * n_hidden]

    def body(j, carry):
        r0 = pl.multiple_of(j * chunk, chunk)
        # (chunk, c_in) rows-on-sublanes; cast to bf16 for the MXU.
        xc = x_ref[pl.ds(r0, chunk), :].astype(jnp.bfloat16)

        # First matmul contracts the channel axis of BOTH operands (A @ B^T pattern),
        # so the result comes out channels-on-sublanes / points-on-lanes (lane-dense)
        # without materializing an explicit transpose of the activations.
        rhs = xc
        points_on_rows = True
        for l in range(n_hidden):
            w = hid_refs[2 * l][...]            # (c_out, c_in) bf16
            s = hid_refs[2 * l + 1][...]        # (c_out, 1)    f32
            if points_on_rows:
                acc = jax.lax.dot_general(
                    w, rhs, (((1,), (1,)), ((), ())),
                    preferred_element_type=jnp.float32)          # (c_out, chunk)
            else:
                acc = jnp.dot(w, rhs, preferred_element_type=jnp.float32)
            # folded-BN shift (lane broadcast) + ReLU, f32 VPU; bf16 operand for next pass
            rhs = jnp.maximum(acc + s, 0.0).astype(jnp.bfloat16)
            points_on_rows = False

        wf = wf_ref[...]
        bf = bf_ref[...]
        if points_on_rows:                       # n_hidden == 0 corner case
            logits_t = jax.lax.dot_general(
                wf, rhs, (((1,), (1,)), ((), ())),
                preferred_element_type=jnp.float32) + bf
        else:
            logits_t = jnp.dot(wf, rhs, preferred_element_type=jnp.float32) + bf

        # max(sigmoid(x)) == sigmoid(max(x)): one EUP exp per point instead of num_class.
        scores = jax.nn.sigmoid(jnp.max(logits_t, axis=0, keepdims=True))   # (1, chunk)

        # Two direct lane-dense sub-slice stores (no lane-axis concat).
        out_ref[pl.ds(0, num_class), pl.ds(r0, chunk)] = logits_t
        out_ref[pl.ds(num_class, 1), pl.ds(r0, chunk)] = scores
        return carry

    jax.lax.fori_loop(0, n_sub, body, 0, unroll=True)


def _choose_tiles(n, tile_n=2048, chunk=256):
    """Pick (tile, chunk, n_sub): tile % chunk == 0, blocks satisfy the (8,128) rule
    (chunk is a multiple of 128), and the row grid keeps >= 2 steps when N spans more
    than one sub-chunk so both v7x TensorCores get work."""
    if n <= chunk:
        return n, n, 1                                   # block dims == full array dims
    tile_n = max(chunk, (tile_n // chunk) * chunk)
    tile = min(tile_n, pl.cdiv(n, chunk) * chunk)
    if pl.cdiv(n, tile) < 2:
        tile = max(chunk, pl.cdiv(n, 2 * chunk) * chunk)
    return tile, chunk, tile // chunk


def seg_mlp_forward(feats, hidden_params, final_w, final_b, num_class,
                    tile_n=2048, chunk=256):
    """Fused MLP + sigmoid-max kernel over all N points.

    feats:         (N, C_in) float32 (read as-is; cast to bf16 inside the kernel)
    hidden_params: list of (W_folded (c_out, c_in) bf16, shift (c_out, 1) f32)
    final_w:       (num_class, C_last) bf16
    final_b:       (num_class, 1) f32
    returns (logits (N, num_class) f32, scores (N,) f32)
    """
    n, c_in = feats.shape
    n_hidden = len(hidden_params)
    tile, chunk, n_sub = _choose_tiles(n, tile_n, chunk)
    n_tiles = pl.cdiv(n, tile)
    out_w = num_class + 1

    flat_params = []
    in_specs = [pl.BlockSpec((tile, c_in), lambda i: (i, 0))]
    for (w, shift) in hidden_params:
        for p in (w, shift):
            flat_params.append(p)
            in_specs.append(pl.BlockSpec(p.shape, lambda i: (0, 0)))
    for p in (final_w, final_b):
        flat_params.append(p)
        in_specs.append(pl.BlockSpec(p.shape, lambda i: (0, 0)))

    out = pl.pallas_call(
        functools.partial(_seg_mlp_kernel, n_hidden, num_class, chunk, n_sub),
        out_shape=jax.ShapeDtypeStruct((out_w, n), jnp.float32),
        grid=(n_tiles,),
        in_specs=in_specs,
        out_specs=pl.BlockSpec((out_w, tile), lambda i: (0, i)),
        compiler_params=pltpu.CompilerParams(
            dimension_semantics=("parallel",),   # row grid shards across TCs (v7x)
        ),
    )(feats, *flat_params)

    # Contiguous row slices of the lane-dense output. The transpose back to the
    # module's (N, num_class) layout is a cheap XLA op over 3*N floats (skip it if the
    # downstream consumer can take (num_class, N) directly).
    cls_logits = out[:num_class, :].T        # (N, num_class)
    cls_scores = out[num_class, :]           # (N,)
    return cls_logits, cls_scores


# --------------------------- parameter init (glue) ---------------------------
def build_seg_mlp_params(key, input_channels, cls_fc, num_class, bn_eps=1e-5):
    """Mirrors build_mlps: [Linear(bias=False), BN1d, ReLU]*len(cls_fc) + Linear(bias).

    Weights are kept in the PyTorch (out, in) layout (the kernel's transposed-MLP
    orientation). Eval-mode BN scale is folded into the preceding Linear weight
    (exact, since the Linear has no bias); only the per-channel shift remains.
    Matmul weights are stored in bf16 for the MXU; shifts/bias stay f32.
    NOTE: eval-mode only — training-mode BN (batch stats + running-stat updates) is
    not represented.
    """
    hidden = []
    c_in = input_channels
    for c_out in cls_fc:
        key, k = jax.random.split(key)
        std = (2.0 / (c_in + c_out)) ** 0.5                       # xavier_normal_
        w = std * jax.random.normal(k, (c_out, c_in), dtype=jnp.float32)
        # BN init: gamma=1, beta=0, running_mean=0, running_var=1 (eval-mode fold)
        gamma = jnp.ones((c_out,), jnp.float32)
        beta = jnp.zeros((c_out,), jnp.float32)
        mean = jnp.zeros((c_out,), jnp.float32)
        var = jnp.ones((c_out,), jnp.float32)
        scale = gamma / jnp.sqrt(var + bn_eps)
        shift = (beta - mean * scale).reshape(c_out, 1)
        w_folded = (w * scale[:, None]).astype(jnp.bfloat16)      # diag(s) @ W
        hidden.append((w_folded, shift))
        c_in = c_out
    key, k = jax.random.split(key)
    std = (2.0 / (c_in + num_class)) ** 0.5
    final_w = (std * jax.random.normal(k, (num_class, c_in), jnp.float32)).astype(jnp.bfloat16)
    final_b = jnp.zeros((num_class, 1), jnp.float32)              # constant_(bias, 0)
    return hidden, final_w, final_b


# ------------------------------ full forward ---------------------------------
def point_segmentor_forward(batch_dict, params, num_class, sample_topk):
    hidden, final_w, final_b = params
    feats = batch_dict['voxel_features']       # (N, C_in)
    coors = batch_dict['point_coords']         # (N, 4)
    numbs = batch_dict['voxel_numbers']        # (bs,) points per batch element

    cls_logits, cls_scores = seg_mlp_forward(feats, hidden, final_w, final_b, num_class)

    if sample_topk:
        bs = batch_dict['batch_size']
        samples = sample_topk
        # TODO(synk): the PyTorch version supports ragged per-batch point counts via
        # torch.split; here we assume equal counts per batch element (static split).
        n_per = feats.shape[0] // bs
        scores_b = cls_scores.reshape(bs, n_per)
        _, topk_idx = jax.lax.top_k(scores_b, samples)            # (bs, samples)
        offsets = (jnp.arange(bs, dtype=jnp.int32) * n_per)[:, None]
        select_indices = (topk_idx + offsets).reshape(-1)         # (bs*samples,)
        batch_dict['point_coords'] = coors[select_indices].reshape(bs, samples, -1)
        batch_dict['point_features'] = feats[select_indices].reshape(bs, samples, -1)
        batch_dict['point_batch_id'] = (
            batch_dict['voxel_coords'][select_indices, 0].reshape(bs, samples, 1)
        )

    batch_dict['cls_logits'] = cls_logits
    return batch_dict


# ------------------------------- reference -----------------------------------
def _reference_logits(feats, params):
    """Pure-JAX reference using the same bf16 operands / f32 accumulation."""
    hidden, final_w, final_b = params
    h = feats.astype(jnp.bfloat16)
    for (w, shift) in hidden:
        a = jnp.dot(h, w.T, preferred_element_type=jnp.float32) + shift[:, 0]
        h = jnp.maximum(a, 0.0).astype(jnp.bfloat16)
    return jnp.dot(h, final_w.T, preferred_element_type=jnp.float32) + final_b[:, 0]


if __name__ == "__main__":
    key = jax.random.PRNGKey(0)

    # small shapes consistent with the module; big enough to exercise a 2-step grid,
    # a partial last tile and the multi-chunk in-kernel loop.
    batch_size = 2
    n_per_batch = 384
    N = batch_size * n_per_batch
    input_channels = 32
    cls_fc = [32, 32]          # model_cfg.CLS_FC
    num_class = 3
    sample_topk = 4            # model_cfg.SAMPLE_TOPK

    k_feat, k_coor, k_par = jax.random.split(key, 3)
    feats = jax.random.normal(k_feat, (N, input_channels), dtype=jnp.float32)
    xyz = jax.random.uniform(k_coor, (N, 3), dtype=jnp.float32) * 10.0
    batch_ids = jnp.repeat(jnp.arange(batch_size, dtype=jnp.float32), n_per_batch)[:, None]
    point_coords = jnp.concatenate([batch_ids, xyz], axis=1)                        # (N, 4)
    voxel_coords = jnp.concatenate([batch_ids, jnp.zeros((N, 3), jnp.float32)], axis=1)
    voxel_numbers = jnp.full((batch_size,), n_per_batch, dtype=jnp.int32)

    params = build_seg_mlp_params(k_par, input_channels, cls_fc, num_class)

    batch_dict = {
        'batch_size': batch_size,
        'voxel_numbers': voxel_numbers,
        'point_coords': point_coords,
        'voxel_features': feats,
        'voxel_coords': voxel_coords,
    }

    out = point_segmentor_forward(batch_dict, params, num_class, sample_topk)
    jax.block_until_ready(out['cls_logits'])
    jax.block_until_ready(out['point_features'])

    # direct kernel check (logits + score column) vs pure-JAX reference
    hidden, final_w, final_b = params
    logits_k, scores_k = seg_mlp_forward(feats, hidden, final_w, final_b, num_class)
    jax.block_until_ready(scores_k)
    ref = _reference_logits(feats, params)
    ref_scores = jax.nn.sigmoid(jnp.max(ref, axis=-1))

    assert out['cls_logits'].shape == (N, num_class)
    assert out['point_coords'].shape == (batch_size, sample_topk, 4)
    assert out['point_features'].shape == (batch_size, sample_topk, input_channels)
    assert out['point_batch_id'].shape == (batch_size, sample_topk, 1)
    assert jnp.allclose(out['cls_logits'], ref, atol=2e-2, rtol=2e-2)
    assert jnp.allclose(logits_k, ref, atol=2e-2, rtol=2e-2)
    assert jnp.allclose(scores_k, ref_scores, atol=5e-3, rtol=5e-3)

    print("KERNEL_OK")
</pallas_src>

<mosaic_0001>
module attributes {stable_mosaic.version = 11 : i64} {
  func.func @_seg_mlp_kernel(%arg0: i32, %arg1: memref<512x32xf32, #tpu.memory_space<vmem>>, %arg2: memref<32x32xbf16, #tpu.memory_space<vmem>>, %arg3: memref<32x1xf32, #tpu.memory_space<vmem>>, %arg4: memref<32x32xbf16, #tpu.memory_space<vmem>>, %arg5: memref<32x1xf32, #tpu.memory_space<vmem>>, %arg6: memref<3x32xbf16, #tpu.memory_space<vmem>>, %arg7: memref<3x1xf32, #tpu.memory_space<vmem>>, %arg8: memref<4x512xf32, #tpu.memory_space<vmem>>) attributes {dimension_semantics = [#tpu.dimension_semantics<parallel>], iteration_bounds = array<i64: 2>, scalar_prefetch = 0 : i64, scratch_operands = 0 : i64, tpu.core_type = #tpu.core_type<tc>, window_params = [{transform_indices = @transform_0, window_bounds = array<i64: 512, 32>}, {pipeline_mode = #tpu.pipeline_mode<synchronous>, transform_indices = @transform_1, window_bounds = array<i64: 32, 32>}, {pipeline_mode = #tpu.pipeline_mode<synchronous>, transform_indices = @transform_2, window_bounds = array<i64: 32, 1>}, {pipeline_mode = #tpu.pipeline_mode<synchronous>, transform_indices = @transform_3, window_bounds = array<i64: 32, 32>}, {pipeline_mode = #tpu.pipeline_mode<synchronous>, transform_indices = @transform_4, window_bounds = array<i64: 32, 1>}, {pipeline_mode = #tpu.pipeline_mode<synchronous>, transform_indices = @transform_5, window_bounds = array<i64: 3, 32>}, {pipeline_mode = #tpu.pipeline_mode<synchronous>, transform_indices = @transform_6, window_bounds = array<i64: 3, 1>}, {transform_indices = @transform_7, window_bounds = array<i64: 4, 512>}]} {
    %c0_i32 = arith.constant 0 : i32
    %c256_i32 = arith.constant 256 : i32
    %0 = arith.muli %c0_i32, %c256_i32 : i32
    %1 = tpu.assume_multiple %0, 256 : i32
    %2 = arith.index_cast %1 : i32 to index
    %c0 = arith.constant 0 : index
    %3 = vector.load %arg1[%2, %c0] : memref<512x32xf32, #tpu.memory_space<vmem>>, vector<256x32xf32>
    %4 = arith.truncf %3 : vector<256x32xf32> to vector<256x32xbf16>
    %c0_0 = arith.constant 0 : index
    %c0_1 = arith.constant 0 : index
    %5 = vector.load %arg2[%c0_0, %c0_1] : memref<32x32xbf16, #tpu.memory_space<vmem>>, vector<32x32xbf16>
    %c0_2 = arith.constant 0 : index
    %c0_3 = arith.constant 0 : index
    %6 = vector.load %arg3[%c0_2, %c0_3] : memref<32x1xf32, #tpu.memory_space<vmem>>, vector<32x1xf32>
    %cst = arith.constant dense<0.000000e+00> : vector<32x256xf32>
    %7 = tpu.matmul %5, %4, %cst {dimension_numbers = #tpu.dot_dimension_numbers<[1], [1], [0], [0], [0, 0, 1, 0], [], []>} : vector<32x32xbf16>, vector<256x32xbf16>, vector<32x256xf32> -> vector<32x256xf32>
    %8 = vector.broadcast %6 : vector<32x1xf32> to vector<32x256xf32>
    %9 = arith.addf %7, %8 : vector<32x256xf32>
    %cst_4 = arith.constant 0.000000e+00 : f32
    %10 = vector.broadcast %cst_4 : f32 to vector<32x256xf32>
    %11 = arith.maximumf %9, %10 : vector<32x256xf32>
    %12 = arith.truncf %11 : vector<32x256xf32> to vector<32x256xbf16>
    %c0_5 = arith.constant 0 : index
    %c0_6 = arith.constant 0 : index
    %13 = vector.load %arg4[%c0_5, %c0_6] : memref<32x32xbf16, #tpu.memory_space<vmem>>, vector<32x32xbf16>
    %c0_7 = arith.constant 0 : index
    %c0_8 = arith.constant 0 : index
    %14 = vector.load %arg5[%c0_7, %c0_8] : memref<32x1xf32, #tpu.memory_space<vmem>>, vector<32x1xf32>
    %cst_9 = arith.constant dense<0.000000e+00> : vector<32x256xf32>
    %15 = tpu.matmul %13, %12, %cst_9 {dimension_numbers = #tpu.dot_dimension_numbers<[1], [0], [0], [1], [0, 0, 1, 1], [], []>} : vector<32x32xbf16>, vector<32x256xbf16>, vector<32x256xf32> -> vector<32x256xf32>
    %16 = vector.broadcast %14 : vector<32x1xf32> to vector<32x256xf32>
    %17 = arith.addf %15, %16 : vector<32x256xf32>
    %cst_10 = arith.constant 0.000000e+00 : f32
    %18 = vector.broadcast %cst_10 : f32 to vector<32x256xf32>
    %19 = arith.maximumf %17, %18 : vector<32x256xf32>
    %20 = arith.truncf %19 : vector<32x256xf32> to vector<32x256xbf16>
    %c0_11 = arith.constant 0 : index
    %c0_12 = arith.constant 0 : index
    %21 = vector.load %arg6[%c0_11, %c0_12] : memref<3x32xbf16, #tpu.memory_space<vmem>>, vector<3x32xbf16>
    %c0_13 = arith.constant 0 : index
    %c0_14 = arith.constant 0 : index
    %22 = vector.load %arg7[%c0_13, %c0_14] : memref<3x1xf32, #tpu.memory_space<vmem>>, vector<3x1xf32>
    %cst_15 = arith.constant dense<0.000000e+00> : vector<3x256xf32>
    %23 = tpu.matmul %21, %20, %cst_15 {dimension_numbers = #tpu.dot_dimension_numbers<[1], [0], [0], [1], [0, 0, 1, 1], [], []>} : vector<3x32xbf16>, vector<32x256xbf16>, vector<3x256xf32> -> vector<3x256xf32>
    %24 = vector.broadcast %22 : vector<3x1xf32> to vector<3x256xf32>
    %25 = arith.addf %23, %24 : vector<3x256xf32>
    %cst_16 = arith.constant dense<0xFF800000> : vector<256xf32>
    %26 = vector.multi_reduction <maximumf>, %25, %cst_16 [0] : vector<3x256xf32> to vector<256xf32>
    %27 = vector.shape_cast %26 : vector<256xf32> to vector<1x256xf32>
    %28 = arith.negf %27 : vector<1x256xf32>
    %29 = math.exp %28 : vector<1x256xf32>
    %cst_17 = arith.constant 1.000000e+00 : f32
    %30 = vector.broadcast %cst_17 : f32 to vector<1x256xf32>
    %31 = arith.addf %30, %29 : vector<1x256xf32>
    %32 = arith.divf %30, %31 : vector<1x256xf32>
    %c0_18 = arith.constant 0 : index
    %33 = arith.index_cast %1 : i32 to index
    %34 = vector.load %arg8[%c0_18, %33] : memref<4x512xf32, #tpu.memory_space<vmem>>, vector<3x256xf32>
    tpu.vector_store %arg8[%c0_18, %33], %25 {strides = array<i32>} : memref<4x512xf32, #tpu.memory_space<vmem>>, vector<3x256xf32>,
    %c3 = arith.constant 3 : index
    %35 = arith.index_cast %1 : i32 to index
    %36 = vector.load %arg8[%c3, %35] : memref<4x512xf32, #tpu.memory_space<vmem>>, vector<1x256xf32>
    tpu.vector_store %arg8[%c3, %35], %32 {strides = array<i32>} : memref<4x512xf32, #tpu.memory_space<vmem>>, vector<1x256xf32>,
    %c1_i32 = arith.constant 1 : i32
    %c256_i32_19 = arith.constant 256 : i32
    %37 = arith.muli %c1_i32, %c256_i32_19 : i32
    %38 = tpu.assume_multiple %37, 256 : i32
    %39 = arith.index_cast %38 : i32 to index
    %c0_20 = arith.constant 0 : index
    %40 = vector.load %arg1[%39, %c0_20] : memref<512x32xf32, #tpu.memory_space<vmem>>, vector<256x32xf32>
    %41 = arith.truncf %40 : vector<256x32xf32> to vector<256x32xbf16>
    %c0_21 = arith.constant 0 : index
    %c0_22 = arith.constant 0 : index
    %42 = vector.load %arg2[%c0_21, %c0_22] : memref<32x32xbf16, #tpu.memory_space<vmem>>, vector<32x32xbf16>
    %c0_23 = arith.constant 0 : index
    %c0_24 = arith.constant 0 : index
    %43 = vector.load %arg3[%c0_23, %c0_24] : memref<32x1xf32, #tpu.memory_space<vmem>>, vector<32x1xf32>
    %cst_25 = arith.constant dense<0.000000e+00> : vector<32x256xf32>
    %44 = tpu.matmul %42, %41, %cst_25 {dimension_numbers = #tpu.dot_dimension_numbers<[1], [1], [0], [0], [0, 0, 1, 0], [], []>} : vector<32x32xbf16>, vector<256x32xbf16>, vector<32x256xf32> -> vector<32x256xf32>
    %45 = vector.broadcast %43 : vector<32x1xf32> to vector<32x256xf32>
    %46 = arith.addf %44, %45 : vector<32x256xf32>
    %cst_26 = arith.constant 0.000000e+00 : f32
    %47 = vector.broadcast %cst_26 : f32 to vector<32x256xf32>
    %48 = arith.maximumf %46, %47 : vector<32x256xf32>
    %49 = arith.truncf %48 : vector<32x256xf32> to vector<32x256xbf16>
    %c0_27 = arith.constant 0 : index
    %c0_28 = arith.constant 0 : index
    %50 = vector.load %arg4[%c0_27, %c0_28] : memref<32x32xbf16, #tpu.memory_space<vmem>>, vector<32x32xbf16>
    %c0_29 = arith.constant 0 : index
    %c0_30 = arith.constant 0 : index
    %51 = vector.load %arg5[%c0_29, %c0_30] : memref<32x1xf32, #tpu.memory_space<vmem>>, vector<32x1xf32>
    %cst_31 = arith.constant dense<0.000000e+00> : vector<32x256xf32>
    %52 = tpu.matmul %50, %49, %cst_31 {dimension_numbers = #tpu.dot_dimension_numbers<[1], [0], [0], [1], [0, 0, 1, 1], [], []>} : vector<32x32xbf16>, vector<32x256xbf16>, vector<32x256xf32> -> vector<32x256xf32>
    %53 = vector.broadcast %51 : vector<32x1xf32> to vector<32x256xf32>
    %54 = arith.addf %52, %53 : vector<32x256xf32>
    %cst_32 = arith.constant 0.000000e+00 : f32
    %55 = vector.broadcast %cst_32 : f32 to vector<32x256xf32>
    %56 = arith.maximumf %54, %55 : vector<32x256xf32>
    %57 = arith.truncf %56 : vector<32x256xf32> to vector<32x256xbf16>
    %c0_33 = arith.constant 0 : index
    %c0_34 = arith.constant 0 : index
    %58 = vector.load %arg6[%c0_33, %c0_34] : memref<3x32xbf16, #tpu.memory_space<vmem>>, vector<3x32xbf16>
    %c0_35 = arith.constant 0 : index
    %c0_36 = arith.constant 0 : index
    %59 = vector.load %arg7[%c0_35, %c0_36] : memref<3x1xf32, #tpu.memory_space<vmem>>, vector<3x1xf32>
    %cst_37 = arith.constant dense<0.000000e+00> : vector<3x256xf32>
    %60 = tpu.matmul %58, %57, %cst_37 {dimension_numbers = #tpu.dot_dimension_numbers<[1], [0], [0], [1], [0, 0, 1, 1], [], []>} : vector<3x32xbf16>, vector<32x256xbf16>, vector<3x256xf32> -> vector<3x256xf32>
    %61 = vector.broadcast %59 : vector<3x1xf32> to vector<3x256xf32>
    %62 = arith.addf %60, %61 : vector<3x256xf32>
    %cst_38 = arith.constant dense<0xFF800000> : vector<256xf32>
    %63 = vector.multi_reduction <maximumf>, %62, %cst_38 [0] : vector<3x256xf32> to vector<256xf32>
    %64 = vector.shape_cast %63 : vector<256xf32> to vector<1x256xf32>
    %65 = arith.negf %64 : vector<1x256xf32>
    %66 = math.exp %65 : vector<1x256xf32>
    %cst_39 = arith.constant 1.000000e+00 : f32
    %67 = vector.broadcast %cst_39 : f32 to vector<1x256xf32>
    %68 = arith.addf %67, %66 : vector<1x256xf32>
    %69 = arith.divf %67, %68 : vector<1x256xf32>
    %c0_40 = arith.constant 0 : index
    %70 = arith.index_cast %38 : i32 to index
    %71 = vector.load %arg8[%c0_40, %70] : memref<4x512xf32, #tpu.memory_space<vmem>>, vector<3x256xf32>
    tpu.vector_store %arg8[%c0_40, %70], %62 {strides = array<i32>} : memref<4x512xf32, #tpu.memory_space<vmem>>, vector<3x256xf32>,
    %c3_41 = arith.constant 3 : index
    %72 = arith.index_cast %38 : i32 to index
    %73 = vector.load %arg8[%c3_41, %72] : memref<4x512xf32, #tpu.memory_space<vmem>>, vector<1x256xf32>
    tpu.vector_store %arg8[%c3_41, %72], %69 {strides = array<i32>} : memref<4x512xf32, #tpu.memory_space<vmem>>, vector<1x256xf32>,
    %c2_i32 = arith.constant 2 : i32
    return
  }
  func.func @transform_0(%arg0: i32) -> (i32, i32) {
    %c0_i32 = arith.constant 0 : i32
    %c0_i32_0 = arith.constant 0 : i32
    return %arg0, %c0_i32 : i32, i32
  }
  func.func @transform_1(%arg0: i32) -> (i32, i32) {
    %c0_i32 = arith.constant 0 : i32
    %c0_i32_0 = arith.constant 0 : i32
    %c0_i32_1 = arith.constant 0 : i32
    return %c0_i32, %c0_i32_0 : i32, i32
  }
  func.func @transform_2(%arg0: i32) -> (i32, i32) {
    %c0_i32 = arith.constant 0 : i32
    %c0_i32_0 = arith.constant 0 : i32
    %c0_i32_1 = arith.constant 0 : i32
    return %c0_i32, %c0_i32_0 : i32, i32
  }
  func.func @transform_3(%arg0: i32) -> (i32, i32) {
    %c0_i32 = arith.constant 0 : i32
    %c0_i32_0 = arith.constant 0 : i32
    %c0_i32_1 = arith.constant 0 : i32
    return %c0_i32, %c0_i32_0 : i32, i32
  }
  func.func @transform_4(%arg0: i32) -> (i32, i32) {
    %c0_i32 = arith.constant 0 : i32
    %c0_i32_0 = arith.constant 0 : i32
    %c0_i32_1 = arith.constant 0 : i32
    return %c0_i32, %c0_i32_0 : i32, i32
  }
  func.func @transform_5(%arg0: i32) -> (i32, i32) {
    %c0_i32 = arith.constant 0 : i32
    %c0_i32_0 = arith.constant 0 : i32
    %c0_i32_1 = arith.constant 0 : i32
    return %c0_i32, %c0_i32_0 : i32, i32
  }
  func.func @transform_6(%arg0: i32) -> (i32, i32) {
    %c0_i32 = arith.constant 0 : i32
    %c0_i32_0 = arith.constant 0 : i32
    %c0_i32_1 = arith.constant 0 : i32
    return %c0_i32, %c0_i32_0 : i32, i32
  }
  func.func @transform_7(%arg0: i32) -> (i32, i32) {
    %c0_i32 = arith.constant 0 : i32
    %c0_i32_0 = arith.constant 0 : i32
    return %c0_i32, %arg0 : i32, i32
  }
}

</mosaic_0001>

<bundles_post_ra>
// kernel: tpu_custom_call.1
= control target key start
LH: loop header
LB: loop body
LE: loop exit
PB: predicated region body
PF: predicated region fallthrough
CT: control target
= control target key end

     0   :  { %12 = vsyncpa [#allocation3], 0  ;;  %s1865_s0 = inlined_call_operand.vmem [shape: f32[768,32], index: 0, kind: input, shape index: {}]   ;;  %s1866_s1 = inlined_call_operand.vmem [shape: bf16[32,32], index: 1, kind: input, shape index: {}]   ;;  %s1867_s2 = inlined_call_operand.vmem [shape: f32[32,1], index: 2, kind: input, shape index: {}]   ;;  %s1868_s3 = inlined_call_operand.vmem [shape: bf16[32,32], index: 3, kind: input, shape index: {}]   ;;  %s1869_s4 = inlined_call_operand.vmem [shape: f32[32,1], index: 4, kind: input, shape index: {}]   ;;  %s1870_s5 = inlined_call_operand.vmem [shape: bf16[3,32], index: 5, kind: input, shape index: {}]   ;;  %s1871_s6 = inlined_call_operand.vmem [shape: f32[3,1], index: 6, kind: input, shape index: {}]   ;;  %s1872_s7 = inlined_call_operand.hbm [shape: f32[4,768], index: 7, kind: output, shape index: {}]  }
   0x1   :  { %14 = vsyncpa [#allocation3 + $0x1], 0  ;;  %s1529_s24 = smov 0   ;;  %s1531_s25 = smov 0  }
   0x2   :  { %s1533_s26 = smov 0   ;;  %s1535_s27 = smov 0  }
   0x3 LB: > { %s1550_s28 = sadd.s32 4294967295, %s1484_s27   ;;  %s1226_s29 = sadd.s32 4294967294, %s1484_s27   ;;  %s1484_s27 = sphi %s1535_s27, %s1880_s27   ;;  %s1480_s26 = sphi %s1533_s26, %s1879_s26   ;;  %s1476_s25 = sphi %s1531_s25, %s1878_s25   ;;  %s1472_s24 = sphi %s1529_s24, %s1877_s24  }
   0x4   : > { %s1554_s30 = sadd.s32 1, %s1484_s27   ;;  %s179_s8 = sadd.s32 1, %s1480_s26 }
   0x5   : > { %s176_s9 = ssub.s32 %s1484_s27, %s1554_s30  ;;  %p189_p0 = scmp.ne.s32.totalorder %s1480_s26, %s1476_s25 }
   0x6   : > { %p177_p1 = scmp.eq.s32.totalorder %s176_s9, 0  ;;  %p190_p2 = scmp.eq.s32.totalorder %s1550_s28, 1 }
   0x7   : > { %p195_p3 = scmp.ne.s32.totalorder %s1476_s25, %s1472_s24  ;;  %p196_p4 = scmp.eq.s32.totalorder %s1226_s29, 1 }
   0x8   : > { %s1565_s10 = scalar_select %p177_p1, %s1480_s26, %s179_s8  }
   0x9   : > { %p1567_p5 = por %p190_p2, %p189_p0  ;;  %p1571_p6 = por %p196_p4, %p195_p3 }
   0xa   : > { %p1229_p7 = scmp.ge.s32.totalorder %s1484_s27, 1  ;;  %p249_p8 = scmp.lt.s32.totalorder %s1484_s27, 3 }
   0xc   : > { %p250_p9 = pnand %p1229_p7, %p249_p8 }
   0xd   : > { %s1231_s13 = sshll.u32 (!%p250_p9), %s1550_s28, 6  ;;  %v1581_v0 = vld [vmem:[%s1866_s1] sm:$0xff] (!%p250_p9)   ;;  %vm391_vm0 = vcmask (!%p250_p9), 261120   ;;  %v359_v2 = vld [vmem:[%s1867_s2 + $0x10] sm:$0xff] (!%p250_p9)  ;;  %v1486_v3 = vmov (!%p250_p9), 0   ;;  %v358_v4 = vld [vmem:[%s1867_s2 + $0x8] sm:$0xff] (!%p250_p9) }
   0xe   : > { %253 = sbr.rel (%p250_p9) target bundleno = 1381 (0x565), region = 48  ;;  %p290_p10 = scmp.lt.s32.totalorder (!%p250_p9), %s1231_s13, 95  ;;  %v357_v1 = vld [vmem:[%s1867_s2] sm:$0xff] (!%p250_p9)  ;;  %1316 = vmatprep.mubr.msk.bf16.mxu0 (!%p250_p9), %vm391_vm0, %v1581_v0  ;;  %1396 = vset.pattern.permute.xlu0 (!%p250_p9), %v1486_v3  ;;  %v360_v5 = vld [vmem:[%s1867_s2 + $0x18] sm:$0xff] (!%p250_p9)  ;;  %v516_v18 = vld [vmem:[%s1869_s4 + $0x8] sm:$0xff] (!%p250_p9)  ;;  %vm671_vm1 = vcmask (!%p250_p9), 1042432  }
   0xf   : > { %363 = vperm.xlu0 (!%p250_p9), %1396, %v357_v1   ;;  %1397 = vset.pattern.permute.xlu1 (!%p250_p9), %v1486_v3  ;;  %v515_v15 = vld [vmem:[%s1869_s4] sm:$0xff] (!%p250_p9)  ;;  %v517_v21 = vld [vmem:[%s1869_s4 + $0x10] sm:$0xff] (!%p250_p9)  ;;  %v518_v24 = vld [vmem:[%s1869_s4 + $0x18] sm:$0xff] (!%p250_p9) }
  0x10   : > { %373 = vperm.xlu1 (!%p250_p9), %1397, %v359_v2   ;;  %587 = vmatprep.mubr.bf16.mxu1 (!%p250_p9), %v1486_v3  ;;  %v621_v41 = vld [vmem:[%s1871_s6] sm:$0x7] (!%p250_p9) }
  0x11   : > { %v1043_v44 = vld [vmem:[%s1871_s6] sm:$0x7] (!%p250_p9) }
  0x13   : > { %368 = vperm.xlu0 (!%p250_p9), %1396, %v358_v4  }
  0x14   : > { %378 = vperm.xlu1 (!%p250_p9), %1397, %v360_v5  }
  0x15   : > { %s1882_s13 = smov (!%p290_p10, %s1231_s13), 95  ;;  %s1291_s21 = sshll.u32 (%p1567_p5), %s1550_s28, 2 }
  0x16   : > { %s1232_s20 = sshll.u32 %s1882_s13, 3  ;;  %s1154_s22 = ssub.s32 (%p1567_p5), 6, %s1291_s21 }
  0x17   : > { %s1603_s14 = scalar_lea.vmem %s1865_s0, %s1232_s20  ;;  %521 = vperm.xlu0 %1396, %v515_v15   ;;  %p1155_p11 = scmp.lt.s32.totalorder (%p1567_p5), %s1154_s22, 4 }
  0x18   : > { %v321_v6 = vld [vmem:[%s1603_s14 + $0x80] sm:$0xff]  ;;  %v322_v7 = vld [vmem:[%s1603_s14 + $0x88] sm:$0xff]  ;;  %v323_v11 = vld [vmem:[%s1603_s14 + $0x90] sm:$0xff]  ;;  %526 = vperm.xlu1 %1397, %v516_v18  }
  0x19   : > { %v305_v8 = vld [vmem:[%s1603_s14] sm:$0xff]  ;;  %v345_v9 = vpack.c.bf16 %v322_v7, %v321_v6  ;;  %v306_v10 = vld [vmem:[%s1603_s14 + $0x8] sm:$0xff]  ;;  %v324_v12 = vld [vmem:[%s1603_s14 + $0x98] sm:$0xff] }
  0x1a   : > { %v337_v13 = vpack.c.bf16 %v306_v10, %v305_v8  ;;  %v346_v14 = vpack.c.bf16 %v324_v12, %v323_v11  ;;  %v307_v16 = vld [vmem:[%s1603_s14 + $0x10] sm:$0xff]  ;;  %v308_v17 = vld [vmem:[%s1603_s14 + $0x18] sm:$0xff]  ;;  %v325_v22 = vld [vmem:[%s1603_s14 + $0xa0] sm:$0xff] }
  0x1b   : > { %1340 = vmatprep.subr.msk.bf16.mxu0 %vm391_vm0, %v345_v9  ;;  %v338_v20 = vpack.c.bf16 %v308_v17, %v307_v16  ;;  %v326_v23 = vld [vmem:[%s1603_s14 + $0xa8] sm:$0xff]  ;;  %531 = vperm.xlu0 %1396, %v517_v21   ;;  %v309_v27 = vld [vmem:[%s1603_s14 + $0x20] sm:$0xff]  ;;  %v327_v30 = vld [vmem:[%s1603_s14 + $0xb0] sm:$0xff] }
  0x1c   : > { %v399_v19 = vsel %vm391_vm0, %v337_v13, 0  ;;  %v347_v26 = vpack.c.bf16 %v326_v23, %v325_v22  ;;  %v310_v28 = vld [vmem:[%s1603_s14 + $0x28] sm:$0xff]  ;;  %536 = vperm.xlu1 %1397, %v518_v24   ;;  %v328_v31 = vld [vmem:[%s1603_s14 + $0xb8] sm:$0xff]  ;;  %v311_v34 = vld [vmem:[%s1603_s14 + $0x30] sm:$0xff] }
  0x1d   : > { %1301 = vmatpush3.bf16.xpose.msra.mxu0 %v399_v19  ;;  %v402_v25 = vsel %vm391_vm0, %v338_v20, 0  ;;  %v339_v29 = vpack.c.bf16 %v310_v28, %v309_v27  ;;  %v348_v33 = vpack.c.bf16 %v328_v31, %v327_v30  ;;  %v312_v35 = vld [vmem:[%s1603_s14 + $0x38] sm:$0xff]  ;;  %v329_v37 = vld [vmem:[%s1603_s14 + $0xc0] sm:$0xff]  ;;  %v330_v38 = vld [vmem:[%s1603_s14 + $0xc8] sm:$0xff] }
  0x1e   : > { %1341 = vmatprep.subr.msk.bf16.mxu0 %vm391_vm0, %v346_v14  ;;  %v340_v36 = vpack.c.bf16 %v312_v35, %v311_v34  ;;  %v349_v40 = vpack.c.bf16 %v330_v38, %v329_v37  ;;  %v313_v42 = vld [vmem:[%s1603_s14 + $0x40] sm:$0xff]  ;;  %v314_v43 = vld [vmem:[%s1603_s14 + $0x48] sm:$0xff]  ;;  %v331_v46 = vld [vmem:[%s1603_s14 + $0xd0] sm:$0xff] }
  0x1f   : > { %786 = vperm.xlu0 %1396, %v357_v1   ;;  %v405_v32 = vsel %vm391_vm0, %v339_v29, 0  ;;  %v341_v45 = vpack.c.bf16 %v314_v43, %v313_v42  ;;  %v332_v47 = vld [vmem:[%s1603_s14 + $0xd8] sm:$0xff]  ;;  %v315_v50 = vld [vmem:[%s1603_s14 + $0x50] sm:$0xff]  ;;  %v333_v53 = vld [vmem:[%s1603_s14 + $0xe0] sm:$0xff] }
  0x20   : > { %791 = vperm.xlu1 %1397, %v358_v4   ;;  %v408_v39 = vsel %vm391_vm0, %v340_v36, 0  ;;  %v350_v49 = vpack.c.bf16 %v332_v47, %v331_v46  ;;  %v316_v51 = vld [vmem:[%s1603_s14 + $0x58] sm:$0xff]  ;;  %v334_v54 = vld [vmem:[%s1603_s14 + $0xe8] sm:$0xff]  ;;  %v317_v57 = vld [vmem:[%s1603_s14 + $0x60] sm:$0xff] }
  0x21   : > { %v411_v48 = vsel %vm391_vm0, %v341_v45, 0  ;;  %v342_v52 = vpack.c.bf16 %v316_v51, %v315_v50  ;;  %v351_v56 = vpack.c.bf16 %v334_v54, %v333_v53  ;;  %v318_v58 = vld [vmem:[%s1603_s14 + $0x68] sm:$0xff]  ;;  %v335_v60 = vld [vmem:[%s1603_s14 + $0xf0] sm:$0xff]  ;;  %v336_v61 = vld [vmem:[%s1603_s14 + $0xf8] sm:$0xff] }
  0x22   : > { %v343_v59 = vpack.c.bf16 %v318_v58, %v317_v57  ;;  %v352_v63 = vpack.c.bf16 %v336_v61, %v335_v60  ;;  %v319_v1 = vld [vmem:[%s1603_s14 + $0x70] sm:$0xff]  ;;  %v1399_v6 = vld [vmem:[%s1866_s1 + $0x8] sm:$0xff]   ;;  %v1400_v38 = vld [vmem:[%s1868_s3] sm:$0xff]  }
  0x23   : > { %796 = vperm.xlu0 %1396, %v359_v2   ;;  %v414_v55 = vsel %vm391_vm0, %v342_v52, 0  ;;  %v320_v2 = vld [vmem:[%s1603_s14 + $0x78] sm:$0xff] }
  0x24   : > { %801 = vperm.xlu1 %1397, %v360_v5   ;;  %v417_v62 = vsel %vm391_vm0, %v343_v59, 0  ;;  %v344_v4 = vpack.c.bf16 %v320_v2, %v319_v1 }
  0x25   : > { %1303 = vmatpush3.bf16.xpose.msra.mxu0 %v402_v25 }
  0x26   : > { %1342 = vmatprep.subr.msk.bf16.mxu0 %vm391_vm0, %v347_v26  ;;  %v420_v5 = vsel %vm391_vm0, %v344_v4, 0 }
  0x27   : > { %943 = vperm.xlu0 %1396, %v515_v15  }
  0x28   : > { %948 = vperm.xlu1 %1397, %v516_v18  }
  0x2b   : > { %953 = vperm.xlu0 %1396, %v517_v21  }
  0x2c   : > { %958 = vperm.xlu1 %1397, %v518_v24  }
  0x2d   : > { %1305 = vmatpush3.bf16.xpose.msra.mxu0 %v405_v32 }
  0x2e   : > { %1343 = vmatprep.subr.msk.bf16.mxu0 %vm391_vm0, %v348_v33 }
  0x2f   : > { %624 = vperm.xlu0 %1396, %v621_v41  }
  0x30   : > { %1046 = vperm.xlu1 %1397, %v1043_v44  }
  0x35   : > { %1307 = vmatpush3.bf16.xpose.msra.mxu0 %v408_v39  ;;  %v1401_v39 = vld [vmem:[%s1868_s3 + $0x8] sm:$0xff]  }
  0x36   : > { %1344 = vmatprep.subr.msk.bf16.mxu0 %vm391_vm0, %v349_v40 }
  0x3d   : > { %1309 = vmatpush3.bf16.xpose.msra.mxu0 %v411_v48 }
  0x3e   : > { %1345 = vmatprep.subr.msk.bf16.mxu0 %vm391_vm0, %v350_v49 }
  0x45   : > { %1311 = vmatpush3.bf16.xpose.msra.mxu0 %v414_v55 }
  0x46   : > { %1346 = vmatprep.subr.msk.bf16.mxu0 %vm391_vm0, %v351_v56 }
  0x4d   : > { %1313 = vmatpush3.bf16.xpose.msra.mxu0 %v417_v62 }
  0x4e   : > { %1347 = vmatprep.subr.msk.bf16.mxu0 %vm391_vm0, %v352_v63 }
  0x55   : > { %1315 = vmatpush3.bf16.xpose.msra.mxu0 %v420_v5 }
  0x5c   : > { %1317 = vmatmul.mubr.msk.bf16.vlgmr.msra.gmra.mrb[0].mxu0 %vm391_vm0, %v1581_v0 }
  0x5d   : > { %1318 = vmatprep.mubr.msk.bf16.mxu0 %vm391_vm0, %v1399_v6 }
  0x64   : > { %1319 = vmatmul.mubr.msk.bf16.gmra.mrb[4].mxu0 %vm391_vm0, %v1399_v6  ;;  %v1261_v6 = vld [vmem:[%s1603_s14 + $0x180] sm:$0xff] }
  0x65   : > { %1009 = vmatprep.mubr.bf16.mxu0 %v1486_v3 }
  0x8e   : > { %v364_v7 = vpop.permute.xlu0 %363 }
  0x8f   : > { %v374_v16 = vpop.permute.xlu1 %373 }
  0x92   : > { %v369_v11 = vpop.permute.xlu0 %368 }
  0x93   : > { %v379_v26 = vpop.permute.xlu1 %378 }
  0x96   : > { %v522_v40 = vpop.permute.xlu0 %521 }
  0x97   : > { %v527_v44 = vpop.permute.xlu1 %526 }
  0x9a   : > { %v532_v55 = vpop.permute.xlu0 %531 }
  0x9b   : > { %v537_v60 = vpop.permute.xlu1 %536 }
 0x12f   : > { %v480_v8 = vpop.f32.mrb[0].mxu0 }
 0x130   : > { %v481_v9 = vadd.f32 %v480_v8, %v364_v7  ;;  %v482_v10 = vpop.f32.mrb[1].mxu0 }
 0x131   : > { %v483_v12 = vadd.f32 %v482_v10, %v364_v7  ;;  %v484_v13 = vpop.f32.mrb[2].mxu0  ;;  %v1262_v7 = vld [vmem:[%s1603_s14 + $0x188] sm:$0xff] }
 0x132   : > { %v485_v14 = vadd.f32 %v484_v13, %v369_v11  ;;  %v486_v15 = vpop.f32.mrb[3].mxu0  ;;  %v499_v18 = vmax.f32 %v481_v9, 0.0  ;;  %v1245_v13 = vld [vmem:[%s1603_s14 + $0x100] sm:$0xff] }
 0x133   : > { %v487_v17 = vadd.f32 %v486_v15, %v369_v11  ;;  %v500_v0 = vmax.f32 %v483_v12, 0.0  ;;  %v768_v12 = vpack.c.bf16 %v1262_v7, %v1261_v6  ;;  %v620_v15 = vld [vmem:[%s1870_s5] sm:$0x3]  ;;  %v787_v6 = vpop.permute.xlu0 %786 }
 0x134   : > { %v501_v19 = vmax.f32 %v485_v14, 0.0  ;;  %v1246_v14 = vld [vmem:[%s1603_s14 + $0x108] sm:$0xff] }
 0x135   : > { %v502_v20 = vmax.f32 %v487_v17, 0.0  ;;  %v760_v17 = vpack.c.bf16 %v1246_v14, %v1245_v13 }
 0x136   : > { %v507_v21 = vpack.c.bf16 %v501_v19, %v499_v18  ;;  %v1263_v18 = vld [vmem:[%s1603_s14 + $0x190] sm:$0xff]  ;;  %v1264_v19 = vld [vmem:[%s1603_s14 + $0x198] sm:$0xff] }
 0x137   : > { %v490_v22 = vpop.f32.mrb[4].mxu0  ;;  %v508_v23 = vpack.c.bf16 %v502_v20, %v500_v0  ;;  %v821_v0 = vsel %vm391_vm0, %v760_v17, 0  ;;  %v769_v20 = vpack.c.bf16 %v1264_v19, %v1263_v18  ;;  %v1756_v7 = vpop.permute.xlu0 %796 }
 0x138   : > { %v491_v24 = vadd.f32 %v490_v22, %v374_v16  ;;  %v492_v25 = vpop.f32.mrb[5].mxu0  ;;  %v1248_v22 = vld [vmem:[%s1603_s14 + $0x118] sm:$0xff] }
 0x139   : > { %v493_v27 = vadd.f32 %v492_v25, %v374_v16  ;;  %v494_v28 = vpop.f32.mrb[6].mxu0  ;;  %555 = vmatprep.subr.bf16.mxu1 %v508_v23  ;;  %v1699_v16 = vld [vmem:[%s1866_s1] sm:$0xff]   ;;  %v1266_v25 = vld [vmem:[%s1603_s14 + $0x1a8] sm:$0xff] }
 0x13a   : > { %v495_v29 = vadd.f32 %v494_v28, %v379_v26  ;;  %v496_v30 = vpop.f32.mrb[7].mxu0  ;;  %556 = vmatpush1.bf16.msra.mxu1 %v507_v21  ;;  %v503_v32 = vmax.f32 %v491_v24, 0.0  ;;  %v1247_v21 = vld [vmem:[%s1603_s14 + $0x110] sm:$0xff]  ;;  %v1265_v24 = vld [vmem:[%s1603_s14 + $0x1a0] sm:$0xff] }
 0x13b   : > { %v497_v31 = vadd.f32 %v496_v30, %v379_v26  ;;  %v504_v34 = vmax.f32 %v493_v27, 0.0  ;;  %v761_v23 = vpack.c.bf16 %v1248_v22, %v1247_v21  ;;  %v770_v27 = vpack.c.bf16 %v1266_v25, %v1265_v24  ;;  %v1249_v28 = vld [vmem:[%s1603_s14 + $0x120] sm:$0xff] }
 0x13c   : > { %v505_v33 = vmax.f32 %v495_v29, 0.0  ;;  %v1250_v29 = vld [vmem:[%s1603_s14 + $0x128] sm:$0xff] }
 0x13d   : > { %v506_v35 = vmax.f32 %v497_v31, 0.0  ;;  %v824_v26 = vsel %vm391_vm0, %v761_v23, 0  ;;  %v762_v30 = vpack.c.bf16 %v1250_v29, %v1249_v28  ;;  %v1267_v31 = vld [vmem:[%s1603_s14 + $0x1b0] sm:$0xff] }
 0x13e   : > { %v509_v36 = vpack.c.bf16 %v505_v33, %v503_v32  ;;  %v1268_v32 = vld [vmem:[%s1603_s14 + $0x1b8] sm:$0xff] }
 0x13f   : > { %v510_v37 = vpack.c.bf16 %v506_v35, %v504_v34  ;;  %v827_v33 = vsel %vm391_vm0, %v762_v30, 0  ;;  %v771_v34 = vpack.c.bf16 %v1268_v32, %v1267_v31  ;;  %v1251_v35 = vld [vmem:[%s1603_s14 + $0x130] sm:$0xff] }
 0x141   : > { %557 = vmatprep.subr.bf16.mxu1 %v510_v37 }
 0x142   : > { %558 = vmatpush1.bf16.msra.mxu1 %v509_v36  ;;  %v1252_v36 = vld [vmem:[%s1603_s14 + $0x138] sm:$0xff] }
 0x143   : > { %v763_v37 = vpack.c.bf16 %v1252_v36, %v1251_v35 }
 0x145   : > { %1239 = vmatmul.mubr.msk.bf16.vlgmr.msra.gmra.mrb[0].mxu1 %vm391_vm0, %v1400_v38  ;;  %v1269_v38 = vld [vmem:[%s1603_s14 + $0x1c0] sm:$0xff] }
 0x146   : > { %597 = vmatprep.mubr.bf16.mxu1 %v1486_v3 }
 0x14d   : > { %1240 = vmatmul.mubr.msk.bf16.gmra.mrb[4].mxu1 %vm391_vm0, %v1401_v39  ;;  %v1270_v39 = vld [vmem:[%s1603_s14 + $0x1c8] sm:$0xff] }
 0x14e   : > { %662 = vmatprep.mubr.bf16.mxu1 %v1486_v3 }
 0x218   : > { %v589_v41 = vpop.f32.mrb[0].mxu1 }
 0x219   : > { %v590_v42 = vadd.f32 %v589_v41, %v522_v40  ;;  %v591_v43 = vpop.f32.mrb[1].mxu1  ;;  %v772_v41 = vpack.c.bf16 %v1270_v39, %v1269_v38  ;;  %v709_v39 = vlaneseq }
 0x21a   : > { %v592_v45 = vadd.f32 %v591_v43, %v522_v40  ;;  %v593_v46 = vpop.f32.mrb[2].mxu1  ;;  %v830_v40 = vsel %vm391_vm0, %v763_v37, 0  ;;  %v1254_v43 = vld [vmem:[%s1603_s14 + $0x148] sm:$0xff]  ;;  %v1487_v37 = vmov 1966171168  }
 0x21b   : > { %v594_v47 = vadd.f32 %v593_v46, %v527_v44  ;;  %v595_v48 = vpop.f32.mrb[3].mxu1  ;;  %v608_v50 = vmax.f32 %v590_v42, 0.0  ;;  %v1253_v42 = vld [vmem:[%s1603_s14 + $0x140] sm:$0xff]  ;;  %v1272_v46 = vld [vmem:[%s1603_s14 + $0x1d8] sm:$0xff]  ;;  %v707_v38 = vunpack.c.l.s4 %v1487_v37  ;;  %vm1772_vm2 = vcmp.lt.s32.totalorder %v709_v39, 256 }
 0x21c   : > { %v596_v49 = vadd.f32 %v595_v48, %v527_v44  ;;  %v609_v52 = vmax.f32 %v592_v45, 0.0  ;;  %v764_v44 = vpack.c.bf16 %v1254_v43, %v1253_v42  ;;  %v1271_v45 = vld [vmem:[%s1603_s14 + $0x1d0] sm:$0xff] }
 0x21d   : > { %v610_v51 = vmax.f32 %v594_v47, 0.0  ;;  %v773_v48 = vpack.c.bf16 %v1272_v46, %v1271_v45 }
 0x21e   : > { %v611_v53 = vmax.f32 %v596_v49, 0.0  ;;  %v833_v47 = vsel %vm391_vm0, %v764_v44, 0  ;;  %v1255_v49 = vld [vmem:[%s1603_s14 + $0x150] sm:$0xff] }
 0x21f   : > { %v616_v54 = vpack.c.bf16 %v610_v51, %v608_v50  ;;  %v1256_v50 = vld [vmem:[%s1603_s14 + $0x158] sm:$0xff] }
 0x220   : > { %v617_v56 = vpack.c.bf16 %v611_v53, %v609_v52  ;;  %v599_v57 = vpop.f32.mrb[4].mxu1  ;;  %v765_v51 = vpack.c.bf16 %v1256_v50, %v1255_v49  ;;  %v1273_v52 = vld [vmem:[%s1603_s14 + $0x1e0] sm:$0xff]  ;;  %v1274_v53 = vld [vmem:[%s1603_s14 + $0x1e8] sm:$0xff] }
 0x221   : > { %v600_v58 = vadd.f32 %v599_v57, %v532_v55  ;;  %v601_v59 = vpop.f32.mrb[5].mxu1  ;;  %v1258_v57 = vld [vmem:[%s1603_s14 + $0x168] sm:$0xff] }
 0x222   : > { %v602_v61 = vadd.f32 %v601_v59, %v532_v55  ;;  %v603_v62 = vpop.f32.mrb[6].mxu1  ;;  %630 = vmatprep.subr.bf16.mxu1 %v617_v56  ;;  %v774_v55 = vpack.c.bf16 %v1274_v53, %v1273_v52  ;;  %v1257_v56 = vld [vmem:[%s1603_s14 + $0x160] sm:$0xff]  ;;  %v1275_v59 = vld [vmem:[%s1603_s14 + $0x1f0] sm:$0xff]  ;;  %v792_v52 = vpop.permute.xlu1 %791 }
 0x223   : > { %v604_v63 = vadd.f32 %v603_v62, %v537_v60  ;;  %v605_v1 = vpop.f32.mrb[7].mxu1  ;;  %631 = vmatpush1.bf16.msra.mxu1 %v616_v54  ;;  %v612_v4 = vmax.f32 %v600_v58, 0.0  ;;  %v836_v54 = vsel %vm391_vm0, %v765_v51, 0  ;;  %v766_v58 = vpack.c.bf16 %v1258_v57, %v1257_v56 }
 0x224   : > { %v606_v2 = vadd.f32 %v605_v1, %v537_v60  ;;  %v613_v8 = vmax.f32 %v602_v61, 0.0  ;;  %v1276_v60 = vld [vmem:[%s1603_s14 + $0x1f8] sm:$0xff] }
 0x225   : > { %v614_v5 = vmax.f32 %v604_v63, 0.0  ;;  %v839_v61 = vsel %vm391_vm0, %v766_v58, 0  ;;  %v775_v62 = vpack.c.bf16 %v1276_v60, %v1275_v59  ;;  %v1259_v63 = vld [vmem:[%s1603_s14 + $0x170] sm:$0xff]  ;;  %v1260_v1 = vld [vmem:[%s1603_s14 + $0x178] sm:$0xff]  ;;  %s282_s14 = sand.u32 1, %s1476_s25  }
 0x226   : > { %v615_v9 = vmax.f32 %v606_v2, 0.0  ;;  %v767_v2 = vpack.c.bf16 %v1260_v1, %v1259_v63  ;;  %s1230_s8 = sshll.u32 %s282_s14, 4  ;;  %s1810_s20 = scalar_lea.sflag [#allocation3], %s282_s14 }
 0x227   : > { %v618_v10 = vpack.c.bf16 %v614_v5, %v612_v4  ;;  %v1403_v5 = vld [vmem:[%s1866_s1 + $0x8] sm:$0xff]   ;;  %s1766_s9 = scalar_lea.vmem [#allocation2], %s1230_s8 }
 0x228   : > { %v619_v11 = vpack.c.bf16 %v615_v9, %v613_v8  ;;  %v842_v4 = vsel %vm391_vm0, %v767_v2, 0  ;;  %v1758_v8 = vpop.permute.xlu0 %943 }
 0x22a   : > { %632 = vmatprep.subr.bf16.mxu1 %v619_v11 }
 0x22b   : > { %633 = vmatpush1.bf16.msra.mxu1 %v618_v10 }
 0x22c   : > { %1348 = vmatprep.subr.msk.bf16.mxu1 %vm391_vm0, %v768_v12  ;;  %v1760_v9 = vpop.permute.xlu0 %953 }
 0x22e   : > { %1241 = vmatmul.mubr.msk.bf16.vlgmr.msra.gmra.mrb[8].mxu1 %vm391_vm0, %v620_v15 }
 0x22f   : > { %1336 = vmatprep.mubr.msk.bf16.mxu1 %vm391_vm0, %v1699_v16 }
 0x230   : > { %v625_v10 = vpop.permute.xlu0 %624 }
 0x234   : > { %1321 = vmatpush3.bf16.xpose.msra.mxu1 %v821_v0 }
 0x235   : > { %1349 = vmatprep.subr.msk.bf16.mxu1 %vm391_vm0, %v769_v20 }
 0x23c   : > { %1323 = vmatpush3.bf16.xpose.msra.mxu1 %v824_v26 }
 0x23d   : > { %1350 = vmatprep.subr.msk.bf16.mxu1 %vm391_vm0, %v770_v27 }
 0x244   : > { %1325 = vmatpush3.bf16.xpose.msra.mxu1 %v827_v33 }
 0x245   : > { %1351 = vmatprep.subr.msk.bf16.mxu1 %vm391_vm0, %v771_v34 }
 0x24c   : > { %1327 = vmatpush3.bf16.xpose.msra.mxu1 %v830_v40  ;;  %v708_v40 = vunpack.c.0.s8 %v707_v38 }
 0x24d   : > { %1352 = vmatprep.subr.msk.bf16.mxu1 %vm391_vm0, %v772_v41  ;;  %v710_v41 = vshrl.u32 %v709_v39, 7 }
 0x24f   : > { %v1769_v43 = vsub.s32 %v708_v40, %v710_v41 }
 0x254   : > { %1329 = vmatpush3.bf16.xpose.msra.mxu1 %v833_v47 }
 0x255   : > { %1353 = vmatprep.subr.msk.bf16.mxu1 %vm391_vm0, %v773_v48 }
 0x25c   : > { %1331 = vmatpush3.bf16.xpose.msra.mxu1 %v836_v54 }
 0x25d   : > { %1354 = vmatprep.subr.msk.bf16.mxu1 %vm391_vm0, %v774_v55 }
 0x264   : > { %1333 = vmatpush3.bf16.xpose.msra.mxu1 %v839_v61 }
 0x265   : > { %1355 = vmatprep.subr.msk.bf16.mxu1 %vm391_vm0, %v775_v62 }
 0x26c   : > { %1335 = vmatpush3.bf16.xpose.msra.mxu1 %v842_v4 }
 0x273   : > { %1337 = vmatmul.mubr.msk.bf16.vlgmr.msra.gmra.mrb[12].mxu1 %vm391_vm0, %v1699_v16 }
 0x274   : > { %1338 = vmatprep.mubr.msk.bf16.mxu1 %vm391_vm0, %v1403_v5 }
 0x27b   : > { %1339 = vmatmul.mubr.msk.bf16.gmra.mrb[16].mxu1 %vm391_vm0, %v1403_v5  ;;  %v802_v5 = vpop.permute.xlu1 %801 }
 0x301   : > { %v664_v11 = vpop.f32.mrb[8].mxu1 }
 0x302   : > { %v665_v12 = vadd.f32 %v664_v11, %v625_v10  ;;  %v666_v13 = vpop.f32.mrb[9].mxu1 }
 0x303   : > { %v667_v14 = vadd.f32 %v666_v13, %v625_v10  ;;  %v668_v15 = vpop.f32.mrb[10].mxu1 }
 0x304   : > { %v672_v16 = vsel %vm671_vm1, %v665_v12, -inf  ;;  %v669_v17 = vpop.f32.mrb[11].mxu1 }
 0x305   : > { %v673_v18 = vrot.slane %v672_v16, 4  ;;  %v679_v19 = vsel %vm671_vm1, %v667_v14, -inf  ;;  %v700_v0 = vcombine.low %v665_v12, %v667_v14 }
 0x306   : > { %v680_v20 = vrot.slane %v679_v19, 4 }
 0x307   : > { %v674_v21 = vmax.f32 %v672_v16, %v673_v18  ;;  %702 = vst [vmem:[%s1766_s9] sm:$0x77] %v700_v0  ;;  %v1404_v0 = vld [vmem:[%s1868_s3] sm:$0xff]  }
 0x308   : > { %v681_v22 = vmax.f32 %v679_v19, %v680_v20 }
 0x309   : > { %v675_v23 = vrot.slane %v674_v21, 2 }
 0x30a   : > { %v682_v24 = vrot.slane %v681_v22, 2 }
 0x30b   : > { %v676_v25 = vmax.f32 %v674_v21, %v675_v23  ;;  %v949_v23 = vpop.permute.xlu1 %948 }
 0x30c   : > { %v683_v26 = vmax.f32 %v681_v22, %v682_v24 }
 0x30d   : > { %v677_v27 = vrot.slane %v676_v25, 1 }
 0x30e   : > { %v684_v28 = vrot.slane %v683_v26, 1 }
 0x30f   : > { %v678_v29 = vmax.f32 %v676_v25, %v677_v27  ;;  %v959_v37 = vpop.permute.xlu1 %958 }
 0x310   : > { %v685_v30 = vmax.f32 %v683_v26, %v684_v28 }
 0x311   : > { %v1242_v31 = vmul.f32 -1.442695, %v678_v29 }
 0x312   : > { %v1243_v32 = vmul.f32 -1.442695, %v685_v30 }
 0x313   : > { %1406 = vpow2.f32 %v1242_v31 }
 0x314   : > { %1408 = vpow2.f32 %v1243_v32 }
 0x31d   : > { %v1407_v33 = vpop.eup %1406 }
 0x31e   : > { %v1409_v34 = vpop.eup %1408  ;;  %v692_v35 = vadd.f32 1.0, %v1407_v33 }
 0x31f   : > { %v693_v36 = vadd.f32 1.0, %v1409_v34 }
 0x320   : > { %1410 = vrcp.f32 %v692_v35 }
 0x321   : > { %1412 = vrcp.f32 %v693_v36 }
 0x32a   : > { %v1411_v42 = vpop.eup %1410 }
 0x32b   : > { %v1413_v44 = vpop.eup %1412 }
 0x32c   : > { %v705_v45 = vcombine.low %v1411_v42, %v1413_v44 }
 0x32e   : > { %v712_v46 = vrot.slane %v705_v45, %v1769_v43 }
 0x330   : > { %v719_v48 = vrot.slane %v712_v46, %v1769_v43 }
 0x332   : > { %1244 = vst.msk [vmem:[%s1766_s9 + $0x3] ss:$4 sm:$0x3] %vm1772_vm2, %v719_v48 }
 0x346   : > { %v902_v49 = vpop.f32.mrb[12].mxu1 }
 0x347   : > { %v903_v50 = vadd.f32 %v902_v49, %v787_v6  ;;  %v904_v51 = vpop.f32.mrb[13].mxu1 }
 0x348   : > { %v905_v53 = vadd.f32 %v904_v51, %v787_v6  ;;  %v906_v54 = vpop.f32.mrb[14].mxu1 }
 0x349   : > { %v907_v55 = vadd.f32 %v906_v54, %v792_v52  ;;  %v908_v56 = vpop.f32.mrb[15].mxu1  ;;  %v921_v58 = vmax.f32 %v903_v50, 0.0  ;;  %v1042_v50 = vld [vmem:[%s1870_s5] sm:$0x3] }
 0x34a   : > { %v909_v57 = vadd.f32 %v908_v56, %v792_v52  ;;  %v922_v60 = vmax.f32 %v905_v53, 0.0 }
 0x34b   : > { %v923_v59 = vmax.f32 %v907_v55, 0.0 }
 0x34c   : > { %v924_v61 = vmax.f32 %v909_v57, 0.0 }
 0x34d   : > { %v929_v62 = vpack.c.bf16 %v923_v59, %v921_v58 }
 0x34e   : > { %v930_v63 = vpack.c.bf16 %v924_v61, %v922_v60  ;;  %v912_v1 = vpop.f32.mrb[16].mxu1 }
 0x34f   : > { %v913_v2 = vadd.f32 %v912_v1, %v1756_v7  ;;  %v914_v4 = vpop.f32.mrb[17].mxu1 }
 0x350   : > { %v915_v10 = vadd.f32 %v914_v4, %v1756_v7  ;;  %v916_v11 = vpop.f32.mrb[18].mxu1  ;;  %977 = vmatprep.subr.bf16.mxu0 %v930_v63  ;;  %v1405_v7 = vld [vmem:[%s1868_s3 + $0x8] sm:$0xff]  }
 0x351   : > { %v917_v6 = vadd.f32 %v916_v11, %v802_v5  ;;  %v918_v12 = vpop.f32.mrb[19].mxu1  ;;  %978 = vmatpush1.bf16.msra.mxu0 %v929_v62  ;;  %v925_v14 = vmax.f32 %v913_v2, 0.0 }
 0x352   : > { %v919_v13 = vadd.f32 %v918_v12, %v802_v5  ;;  %v926_v16 = vmax.f32 %v915_v10, 0.0 }
 0x353   : > { %v927_v15 = vmax.f32 %v917_v6, 0.0 }
 0x354   : > { %v928_v17 = vmax.f32 %v919_v13, 0.0 }
 0x355   : > { %v931_v18 = vpack.c.bf16 %v927_v15, %v925_v14 }
 0x356   : > { %v932_v19 = vpack.c.bf16 %v928_v17, %v926_v16 }
 0x358   : > { %979 = vmatprep.subr.bf16.mxu0 %v932_v19 }
 0x359   : > { %980 = vmatpush1.bf16.msra.mxu0 %v931_v18 }
 0x35c   : > { %1283 = vmatmul.mubr.msk.bf16.vlgmr.msra.gmra.mrb[8].mxu0 %vm391_vm0, %v1404_v0 }
 0x35d   : > { %1019 = vmatprep.mubr.bf16.mxu0 %v1486_v3 }
 0x364   : > { %1284 = vmatmul.mubr.msk.bf16.gmra.mrb[12].mxu0 %vm391_vm0, %v1405_v7 }
 0x365   : > { %1084 = vmatprep.mubr.bf16.mxu0 %v1486_v3 }
 0x42f   : > { %v1011_v20 = vpop.f32.mrb[8].mxu0 }
 0x430   : > { %v1012_v21 = vadd.f32 %v1011_v20, %v1758_v8  ;;  %v1013_v22 = vpop.f32.mrb[9].mxu0 }
 0x431   : > { %v1014_v24 = vadd.f32 %v1013_v22, %v1758_v8  ;;  %v1015_v25 = vpop.f32.mrb[10].mxu0 }
 0x432   : > { %v1016_v26 = vadd.f32 %v1015_v25, %v949_v23  ;;  %v1017_v27 = vpop.f32.mrb[11].mxu0  ;;  %v1030_v29 = vmax.f32 %v1012_v21, 0.0 }
 0x433   : > { %v1018_v28 = vadd.f32 %v1017_v27, %v949_v23  ;;  %v1031_v31 = vmax.f32 %v1014_v24, 0.0 }
 0x434   : > { %v1032_v30 = vmax.f32 %v1016_v26, 0.0 }
 0x435   : > { %v1033_v32 = vmax.f32 %v1018_v28, 0.0 }
 0x436   : > { %v1038_v33 = vpack.c.bf16 %v1032_v30, %v1030_v29 }
 0x437   : > { %v1039_v34 = vpack.c.bf16 %v1033_v32, %v1031_v31  ;;  %v1021_v35 = vpop.f32.mrb[12].mxu0 }
 0x438   : > { %v1022_v3 = vadd.f32 %v1021_v35, %v1760_v9  ;;  %v1023_v36 = vpop.f32.mrb[13].mxu0 }
 0x439   : > { %v1024_v38 = vadd.f32 %v1023_v36, %v1760_v9  ;;  %v1025_v39 = vpop.f32.mrb[14].mxu0  ;;  %1052 = vmatprep.subr.bf16.mxu0 %v1039_v34  ;;  %v1047_v9 = vpop.permute.xlu1 %1046 }
 0x43a   : > { %v1026_v8 = vadd.f32 %v1025_v39, %v959_v37  ;;  %v1027_v40 = vpop.f32.mrb[15].mxu0  ;;  %1053 = vmatpush1.bf16.msra.mxu0 %v1038_v33  ;;  %v1034_v42 = vmax.f32 %v1022_v3, 0.0 }
 0x43b   : > { %v1028_v41 = vadd.f32 %v1027_v40, %v959_v37  ;;  %v1035_v45 = vmax.f32 %v1024_v38, 0.0 }
 0x43c   : > { %v1036_v44 = vmax.f32 %v1026_v8, 0.0 }
 0x43d   : > { %v1037_v46 = vmax.f32 %v1028_v41, 0.0 }
 0x43e   : > { %v1040_v48 = vpack.c.bf16 %v1036_v44, %v1034_v42 }
 0x43f   : > { %v1041_v49 = vpack.c.bf16 %v1037_v46, %v1035_v45 }
 0x441   : > { %1054 = vmatprep.subr.bf16.mxu0 %v1041_v49 }
 0x442   : > { %1055 = vmatpush1.bf16.msra.mxu0 %v1040_v48 }
 0x445   : > { %1285 = vmatmul.mubr.msk.bf16.vlgmr.msra.gmra.mrb[16].mxu0 %vm391_vm0, %v1042_v50 }
 0x518   : > { %v1086_v51 = vpop.f32.mrb[16].mxu0 }
 0x519   : > { %v1087_v52 = vadd.f32 %v1086_v51, %v1047_v9  ;;  %v1088_v53 = vpop.f32.mrb[17].mxu0 }
 0x51a   : > { %v1089_v54 = vadd.f32 %v1088_v53, %v1047_v9  ;;  %v1090_v55 = vpop.f32.mrb[18].mxu0 }
 0x51b   : > { %v1093_v56 = vsel %vm671_vm1, %v1087_v52, -inf  ;;  %v1091_v57 = vpop.f32.mrb[19].mxu0 }
 0x51c   : > { %v1094_v58 = vrot.slane %v1093_v56, 4  ;;  %v1100_v59 = vsel %vm671_vm1, %v1089_v54, -inf  ;;  %v1121_v60 = vcombine.low %v1087_v52, %v1089_v54 }
 0x51d   : > { %v1101_v61 = vrot.slane %v1100_v59, 4 }
 0x51e   : > { %v1095_v62 = vmax.f32 %v1093_v56, %v1094_v58  ;;  %1288 = vst [vmem:[%s1766_s9 + $0x8] sm:$0x77] %v1121_v60 }
 0x51f   : > { %v1102_v63 = vmax.f32 %v1100_v59, %v1101_v61 }
 0x520   : > { %v1096_v1 = vrot.slane %v1095_v62, 2 }
 0x521   : > { %v1103_v2 = vrot.slane %v1102_v63, 2 }
 0x522   : > { %v1097_v4 = vmax.f32 %v1095_v62, %v1096_v1 }
 0x523   : > { %v1104_v5 = vmax.f32 %v1102_v63, %v1103_v2 }
 0x524   : > { %v1098_v10 = vrot.slane %v1097_v4, 1 }
 0x525   : > { %v1105_v11 = vrot.slane %v1104_v5, 1 }
 0x526   : > { %v1099_v6 = vmax.f32 %v1097_v4, %v1098_v10 }
 0x527   : > { %v1106_v12 = vmax.f32 %v1104_v5, %v1105_v11 }
 0x528   : > { %v1286_v13 = vmul.f32 -1.442695, %v1099_v6 }
 0x529   : > { %v1287_v14 = vmul.f32 -1.442695, %v1106_v12 }
 0x52a   : > { %1414 = vpow2.f32 %v1286_v13 }
 0x52b   : > { %1416 = vpow2.f32 %v1287_v14 }
 0x534   : > { %v1415_v15 = vpop.eup %1414 }
 0x535   : > { %v1417_v16 = vpop.eup %1416  ;;  %v1113_v17 = vadd.f32 1.0, %v1415_v15 }
 0x536   : > { %v1114_v18 = vadd.f32 1.0, %v1417_v16 }
 0x537   : > { %1418 = vrcp.f32 %v1113_v17 }
 0x538   : > { %1420 = vrcp.f32 %v1114_v18 }
 0x541   : > { %v1419_v19 = vpop.eup %1418 }
 0x542   : > { %v1421_v0 = vpop.eup %1420 }
 0x543   : > { %v1127_v7 = vcombine.low %v1419_v19, %v1421_v0  ;;  %1152 = sbr.rel (!%p1567_p5) target bundleno = 1381 (0x565), region = 52 }
 0x545   : > { %v1134_v20 = vrot.slane %v1127_v7, %v1769_v43 }
 0x547   : > { %v1141_v21 = vrot.slane %v1134_v20, %v1769_v43 }
 0x549   : > { %1289 = vst.msk [vmem:[%s1766_s9 + $0xb] ss:$4 sm:$0x3] %vm1772_vm2, %v1141_v21 }
 0x54a   : > { %s1884_s22 = smov (!%p1155_p11, %s1154_s22), 4 }
 0x54b   : > { %s1815_s23 = sshll.u32 %s1884_s22, 6 }
 0x54c   : > { %s1159_s29 = ssub.s32 256, %s1815_s23 }
 0x54d   : > { %1160 = vsyncadd %s1810_s20, %s1159_s29  ;;  %p1293_p12 = scmp.ne.s32.totalorder %s1815_s23, 0  ;;  %s1299_s14 = sshll.u32 %s1550_s28, 8 }
 0x54e   : > { %s1824_s13 = scalar_lea.hbm %s1872_s7, %s1299_s14  ;;  %s1166_s15 = sshll.u32 %s1766_s9, 4  ;;  %s1167_s15 = int_to_ptr.vmem [resolvable:$true] %s1166_s15 }
 0x54f   : > { %s1422_s16 = scalar_lea.vmem %s1167_s15, %s1815_s23  ;;  %s1488_s17 = smov [#allocation2]  }
 0x550   : > { %p1423_p13 = scmp.ne.s32.totalorder %s1167_s15, %s1422_s16  ;;  %s1426_s18 = sshll.u32 %s1488_s17, 4  ;;  %s1427_s18 = int_to_ptr.vmem [resolvable:$false] %s1426_s18 }
 0x551   : > { %s1428_s19 = scalar_lea.vmem %s1427_s18, 512  ;;  %p1429_p2 = scmp.lt.s32.totalorder %s1167_s15, %s1427_s18 }
 0x552   : > { %p1424_p0 = pnand %p1423_p13, %p1293_p12  ;;  %p1430_p3 = scmp.lt.s32.totalorder %s1428_s19, %s1422_s16 }
 0x554   : > { %p1425_p1 = pneg %p1424_p0  ;;  %p1431_p4 = por %p1430_p3, %p1429_p2 }
 0x556   : > { %p1432_p5 = pnand %p1431_p4, %p1425_p1 }
 0x558   : > { %1435 = shalt.err (!%p1432_p5)
}
 0x559   : > { %s1436_s28 = scalar_lea.hbm %s1824_s13, %s1815_s23  ;;  %s1440_s22 = scalar_lea.hbm %s1872_s7, 384 }
 0x55a   : > { %p1437_p7 = scmp.ne.s32.totalorder %s1824_s13, %s1436_s28  ;;  %p1441_p10 = scmp.lt.u32.totalorder %s1824_s13, %s1872_s7 }
 0x55b   : > { %p1442_p11 = scmp.lt.u32.totalorder %s1440_s22, %s1436_s28  ;;  %p1444_p0 = scmp.lt.u32.totalorder %s1436_s28, %s1824_s13 }
 0x55c   : > { %p1438_p8 = pnand %p1437_p7, %p1293_p12 }
 0x55d   : > { %p1443_p13 = por %p1442_p11, %p1441_p10 }
 0x55e   : > { %p1439_p9 = pneg %p1438_p8 }
 0x55f   : > { %p1445_p1 = por %p1444_p0, %p1443_p13 }
 0x561   : > { %p1446_p2 = pnand %p1445_p1, %p1439_p9 }
 0x563   : > { %1449 = shalt.err (!%p1446_p2)
}
 0x564   : > { %1169 = dma.vmem_to_hbm [thread:$0]  (%p1293_p12), %s1167_s15, %s1815_s23, %s1824_s13, %s1810_s20  }
 0x565 PF: > { %p1361_p3 = scmp.ge.s32.totalorder %s1484_s27, 2  ;;  %s1178_s11 = sand.u32 1, %s1472_s24  }
 0x566   : > { %s1179_s8 = scalar_lea.sflag [#allocation3], %s1178_s11 }
 0x567   : > { %p1358_p4 = pnand %p1361_p3, %p1571_p6 }
 0x569   : > { %1467 = dma.done.wait (!%p1358_p4), %s1179_s8, 256  }
 0x56a   : > { %1469 = vsyncadd (!%p1358_p4), %s1179_s8, 4294967040  ;;  %p17_p5 = scmp.ge.s32.totalorder %s1554_s30, 4   ;;  %s1877_s24 = smov %s1476_s25 }
 0x56b   : > { %s1878_s25 = smov %s1480_s26  ;;  %s1879_s26 = smov %s1565_s10 }
 0x56c   : > { %s1880_s27 = smov %s1554_s30  ;;  %19 = sbr.rel (!%p17_p5) target bundleno = 3 (0x3), region = 87 }
 0x573   :  { %1184 = vsyncpa [#allocation3], 1 }
 0x574   :  { %1186 = vsyncpa [#allocation3 + $0x1], 1 }

</bundles_post_ra>
